<compile_context>
chip_gen: v6e
topology: v6e:2x2x1
jax: 0.10.0
libtpu: 0.0.40
codegen_flags: <defaults>
</compile_context>

<pallas_src>
import math

import jax
import jax.numpy as jnp
from jax import lax
from jax.experimental import pallas as pl
from jax.experimental.pallas import tpu as pltpu

_LANES = 128
_SUBLANES = 8
# Total budget for the double-buffered (input + output) VMEM tiles.  Kept
# comfortably under v5e's 16 MiB scoped-VMEM default (v6e/v7x default: 32 MiB).
_VMEM_TILE_BUDGET = 10 * 1024 * 1024
# Keep at least this many grid steps when the batch is large enough
# (pipeline overlap everywhere; megacore sharding on v7x).
_MIN_GRID_STEPS = 4
# Python-unroll the feature MAC only for tiny D.
_MAC_UNROLL_MAX = 16


def _round_up(x, m):
    return (x + m - 1) // m * m


def _binary_classifier_kernel(x_ref, w_ref, b_ref, o_ref):
    """One batch tile.

    x_ref: (D, TBS, 128) VMEM -- feature-major input; batch folded over
                                 sublanes (TBS) and lanes (128), fully dense.
    w_ref: (D,) SMEM           -- fc weight scalars.
    b_ref: (1,) SMEM           -- fc bias scalar.
    o_ref: (TBS, 128) VMEM     -- sigmoid(x @ W^T + b), dense vreg stores.
    """
    d_features = x_ref.shape[0]

    # f32 accumulation over dense (TBS, 128) vregs; weights are scalar operands
    # read from SMEM, so no MXU and no padded (D, 1) VMEM tile.
    z = x_ref[0].astype(jnp.float32) * w_ref[0]
    if d_features <= _MAC_UNROLL_MAX:
        for d in range(1, d_features):
            z = z + x_ref[d].astype(jnp.float32) * w_ref[d]
    else:
        # TODO(synk): for very large input_dim, add a K grid axis ("arbitrary",
        # last) with a VMEM accumulator instead of holding the full
        # (D, TBS, 128) tile in VMEM.
        def mac(d, acc):
            return acc + x_ref[d].astype(jnp.float32) * w_ref[d]

        z = lax.fori_loop(1, d_features, mac, z)

    z = z + b_ref[0]
    # exp + reciprocal issue on the otherwise-idle EUP slot.
    o_ref[...] = jax.nn.sigmoid(z).astype(o_ref.dtype)


def binary_classifier_forward(x, weight, bias):
    """sigmoid(x @ weight.T + bias), matching PyTorch nn.Linear(D, 1) + sigmoid.

    Args:
      x:      (B, D) float32 or bfloat16
      weight: (1, D) float32  -- PyTorch nn.Linear weight layout
      bias:   (1,)   float32
    Returns:
      (B, 1) array of x.dtype
    """
    B, D = x.shape
    assert weight.shape == (1, D), weight.shape

    itemsize = jnp.dtype(x.dtype).itemsize

    # ---- Tile sizing: batch folded over sublanes x lanes -------------------
    rows = pl.cdiv(B, _LANES)                 # sublane-rows of 128 batch elems
    # One sublane-row of the x tile (D slabs) plus one row of the output tile.
    bytes_per_row = _LANES * (D * itemsize + itemsize)
    budget_rows = max(
        _SUBLANES,
        (_VMEM_TILE_BUDGET // (2 * bytes_per_row)) // _SUBLANES * _SUBLANES,
    )
    steps_rows = _round_up(pl.cdiv(rows, _MIN_GRID_STEPS), _SUBLANES)
    tile_rows = min(budget_rows, steps_rows)
    if tile_rows >= rows:
        tile_rows = rows                      # single tile covers full extent
    grid_steps = pl.cdiv(rows, tile_rows)
    rows_pad = grid_steps * tile_rows         # no partial blocks -> no garbage
    b_pad = rows_pad * _LANES

    # ---- Layout plumbing: feature-major, lane/sublane-dense batch ----------
    # TODO(synk): ideally the upstream producer emits activations feature-major
    # so this relayout disappears; allow_input_fusion below lets XLA absorb it
    # into the pallas_call input when it can.
    if b_pad != B:
        x = jnp.pad(x, ((0, b_pad - B), (0, 0)))
    x_r = x.T.reshape(D, rows_pad, _LANES)
    w_smem = weight.astype(jnp.float32).reshape(D)
    b_smem = bias.astype(jnp.float32).reshape(1)

    cost = pl.CostEstimate(
        flops=2 * b_pad * D,
        transcendentals=b_pad,
        bytes_accessed=b_pad * D * itemsize + b_pad * itemsize + (D + 1) * 4,
    )

    out = pl.pallas_call(
        _binary_classifier_kernel,
        out_shape=jax.ShapeDtypeStruct((rows_pad, _LANES), x.dtype),
        grid=(grid_steps,),
        in_specs=[
            pl.BlockSpec((D, tile_rows, _LANES), lambda i: (0, i, 0)),   # x
            pl.BlockSpec(memory_space=pltpu.MemorySpace.SMEM),           # weight
            pl.BlockSpec(memory_space=pltpu.MemorySpace.SMEM),           # bias
        ],
        out_specs=pl.BlockSpec((tile_rows, _LANES), lambda i: (i, 0)),
        compiler_params=pltpu.CompilerParams(
            dimension_semantics=("parallel",),
            allow_input_fusion=[True, False, False],
        ),
        cost_estimate=cost,
    )(x_r, w_smem, b_smem)

    # (rows_pad, 128) -> flat (contiguous) -> first B rows -> (B, 1).
    return out.reshape(b_pad)[:B].reshape(B, 1)


if __name__ == "__main__":
    # Shapes implied by the module: x = torch.randn(5, 3), input_dim = 3.
    batch, input_dim = 5, 3

    key = jax.random.PRNGKey(0)
    kx, kw, kb = jax.random.split(key, 3)

    x = jax.random.normal(kx, (batch, input_dim), dtype=jnp.float32)

    # Deterministic init mimicking nn.Linear: U(-1/sqrt(in), 1/sqrt(in))
    bound = 1.0 / math.sqrt(input_dim)
    weight = jax.random.uniform(kw, (1, input_dim), dtype=jnp.float32,
                                minval=-bound, maxval=bound)
    bias = jax.random.uniform(kb, (1,), dtype=jnp.float32,
                              minval=-bound, maxval=bound)

    fwd = jax.jit(binary_classifier_forward)

    out = jax.block_until_ready(fwd(x, weight, bias))
    ref = jax.nn.sigmoid(x @ weight.T + bias)
    assert out.shape == (batch, 1)
    assert jnp.allclose(out, ref, atol=1e-5), (out, ref)

    # Second check: exercise the multi-step grid / padded-batch path with the
    # same weights (1280 rows -> 2 grid steps of 8 sublane-rows each).
    big_batch = 1280
    xb = jax.random.normal(jax.random.PRNGKey(1), (big_batch, input_dim),
                           dtype=jnp.float32)
    out_big = jax.block_until_ready(fwd(xb, weight, bias))
    ref_big = jax.nn.sigmoid(xb @ weight.T + bias)
    assert out_big.shape == (big_batch, 1)
    assert jnp.allclose(out_big, ref_big, atol=1e-5)

    print("KERNEL_OK")
</pallas_src>

<mosaic_0001>
module attributes {stable_mosaic.version = 11 : i64} {
  func.func @_binary_classifier_kernel(%arg0: i32, %arg1: memref<3x1x128xf32, #tpu.memory_space<vmem>>, %arg2: memref<3xf32, #tpu.memory_space<smem>>, %arg3: memref<1xf32, #tpu.memory_space<smem>>, %arg4: memref<1x128xf32, #tpu.memory_space<vmem>>) attributes {dimension_semantics = [#tpu.dimension_semantics<parallel>], iteration_bounds = array<i64: 1>, scalar_prefetch = 0 : i64, scratch_operands = 0 : i64, tpu.core_type = #tpu.core_type<tc>, window_params = [{transform_indices = @transform_0, window_bounds = array<i64: 3, 1, 128>}, {transform_indices = @transform_1, window_bounds = array<i64: 3>}, {transform_indices = @transform_2, window_bounds = array<i64: 1>}, {transform_indices = @transform_3, window_bounds = array<i64: 1, 128>}]} {
    %c0 = arith.constant 0 : index
    %c0_0 = arith.constant 0 : index
    %c0_1 = arith.constant 0 : index
    %0 = vector.load %arg1[%c0, %c0_0, %c0_1] : memref<3x1x128xf32, #tpu.memory_space<vmem>>, vector<1x1x128xf32>
    %1 = vector.shape_cast %0 : vector<1x1x128xf32> to vector<1x128xf32>
    %c0_2 = arith.constant 0 : index
    %2 = memref.load %arg2[%c0_2] : memref<3xf32, #tpu.memory_space<smem>>
    %3 = vector.broadcast %2 : f32 to vector<1x128xf32>
    %4 = arith.mulf %1, %3 : vector<1x128xf32>
    %c1 = arith.constant 1 : index
    %c0_3 = arith.constant 0 : index
    %c0_4 = arith.constant 0 : index
    %5 = vector.load %arg1[%c1, %c0_3, %c0_4] : memref<3x1x128xf32, #tpu.memory_space<vmem>>, vector<1x1x128xf32>
    %6 = vector.shape_cast %5 : vector<1x1x128xf32> to vector<1x128xf32>
    %c1_5 = arith.constant 1 : index
    %7 = memref.load %arg2[%c1_5] : memref<3xf32, #tpu.memory_space<smem>>
    %8 = vector.broadcast %7 : f32 to vector<1x128xf32>
    %9 = arith.mulf %6, %8 : vector<1x128xf32>
    %10 = arith.addf %4, %9 : vector<1x128xf32>
    %c2 = arith.constant 2 : index
    %c0_6 = arith.constant 0 : index
    %c0_7 = arith.constant 0 : index
    %11 = vector.load %arg1[%c2, %c0_6, %c0_7] : memref<3x1x128xf32, #tpu.memory_space<vmem>>, vector<1x1x128xf32>
    %12 = vector.shape_cast %11 : vector<1x1x128xf32> to vector<1x128xf32>
    %c2_8 = arith.constant 2 : index
    %13 = memref.load %arg2[%c2_8] : memref<3xf32, #tpu.memory_space<smem>>
    %14 = vector.broadcast %13 : f32 to vector<1x128xf32>
    %15 = arith.mulf %12, %14 : vector<1x128xf32>
    %16 = arith.addf %10, %15 : vector<1x128xf32>
    %c0_9 = arith.constant 0 : index
    %17 = memref.load %arg3[%c0_9] : memref<1xf32, #tpu.memory_space<smem>>
    %18 = vector.broadcast %17 : f32 to vector<1x128xf32>
    %19 = arith.addf %16, %18 : vector<1x128xf32>
    %20 = arith.negf %19 : vector<1x128xf32>
    %21 = math.exp %20 : vector<1x128xf32>
    %cst = arith.constant 1.000000e+00 : f32
    %22 = vector.broadcast %cst : f32 to vector<1x128xf32>
    %23 = arith.addf %22, %21 : vector<1x128xf32>
    %24 = arith.divf %22, %23 : vector<1x128xf32>
    %c0_10 = arith.constant 0 : index
    %c0_11 = arith.constant 0 : index
    %25 = vector.load %arg4[%c0_10, %c0_11] : memref<1x128xf32, #tpu.memory_space<vmem>>, vector<1x128xf32>
    tpu.vector_store %arg4[%c0_10, %c0_11], %24 {strides = array<i32>} : memref<1x128xf32, #tpu.memory_space<vmem>>, vector<1x128xf32>,
    return
  }
  func.func @transform_0(%arg0: i32) -> (i32, i32, i32) {
    %c0_i32 = arith.constant 0 : i32
    %c0_i32_0 = arith.constant 0 : i32
    %c0_i32_1 = arith.constant 0 : i32
    return %c0_i32, %arg0, %c0_i32_0 : i32, i32, i32
  }
  func.func @transform_1(%arg0: i32) -> i32 {
    %c0_i32 = arith.constant 0 : i32
    %c0_i32_0 = arith.constant 0 : i32
    return %c0_i32 : i32
  }
  func.func @transform_2(%arg0: i32) -> i32 {
    %c0_i32 = arith.constant 0 : i32
    %c0_i32_0 = arith.constant 0 : i32
    return %c0_i32 : i32
  }
  func.func @transform_3(%arg0: i32) -> (i32, i32) {
    %c0_i32 = arith.constant 0 : i32
    %c0_i32_0 = arith.constant 0 : i32
    return %arg0, %c0_i32 : i32, i32
  }
}

</mosaic_0001>

<bundles_post_ra>
// kernel: binary_classifier_forward.2
= control target key start
LH: loop header
LB: loop body
LE: loop exit
PB: predicated region body
PF: predicated region fallthrough
CT: control target
= control target key end

     0   :  { %9 = vsyncpa [#allocation4], 0  ;;  %s138_s0 = inlined_call_operand.vmem [shape: f32[3], index: 0, kind: input, shape index: {}]   ;;  %s139_s1 = inlined_call_operand.<no memory space> [shape: f32[1], index: 1, kind: input, shape index: {}]   ;;  %s140_s2 = inlined_call_operand.vmem [shape: f32[3,128], index: 2, kind: input, shape index: {}]   ;;  %s141_s3 = inlined_call_operand.vmem [shape: f32[1,128], index: 3, kind: output, shape index: {}]  }
   0x1   :  { %s18_s14 = sshll.u32 %s138_s0, 4  ;;  %s19_s14 = int_to_ptr.vmem [resolvable:$true] %s18_s14 }
   0x2   :  { %s85_s15 = scalar_lea.vmem %s19_s14, 16  ;;  %p90_p1 = scmp.lt.s32.totalorder %s19_s14, %s19_s14 }
   0x3   :  { %p86_p0 = scmp.ne.s32.totalorder %s19_s14, %s85_s15  ;;  %p91_p2 = scmp.lt.s32.totalorder %s85_s15, %s85_s15 }
   0x5   :  { %p92_p3 = por %p91_p2, %p90_p1 }
   0x7   :  { %p93_p4 = pnand %p92_p3, %p86_p0 }
   0x9   :  { %96 = shalt.err (!%p93_p4)
}
   0xa   :  { %s99_s16 = smov [#allocation3]  }
   0xb   :  { %21 = dma.vmem_to_smem %s19_s14, 16, %s99_s16, [#allocation4]  }
   0xc   :  { %97 = dma.done.wait [#allocation4], 16  }
   0xd   :  { %98 = vsyncadd [#allocation4], 4294967280 }
   0xe   :  { %27 = sfence }
   0xf   :  { %v28_v0 = vld [vmem:[%s140_s2] ss:$0 sm:$0xff]  ;;  %v75_v1 = vld [vmem:[%s140_s2 + $0x1] ss:$0 sm:$0xff]  ;;  %v76_v2 = vld [vmem:[%s140_s2 + $0x2] ss:$0 sm:$0xff]  ;;  %v61_v13 = vstv %s139_s1 }
  0x10   :  { %31 = vst [vmem:[#allocation5] sm:$0x1] %v28_v0  ;;  %37 = vst [vmem:[#allocation5 + $0x1] sm:$0x1] %v75_v1  ;;  %s45_s22 = sld [smem:[#allocation3]] }
  0x11   :  { %43 = vst [vmem:[#allocation5 + $0x2] sm:$0x1] %v76_v2  ;;  %s77_s23 = sld [smem:[#allocation3 + $0x1]] }
  0x12   :  { %s78_s24 = sld [smem:[#allocation3 + $0x2]] }
  0x16   :  { %v46_v3 = vstv %s45_s22 }
  0x17   :  { %v44_v4 = vld [vmem:[#allocation5] sm:$0x1]  ;;  %v49_v5 = vld [vmem:[#allocation5 + $0x1] sm:$0x1]  ;;  %v51_v6 = vstv %s77_s23 }
  0x18   :  { %v55_v7 = vld [vmem:[#allocation5 + $0x2] sm:$0x1]  ;;  %v47_v8 = vmul.f32 %v46_v3, %v44_v4  ;;  %v52_v9 = vmul.f32 %v51_v6, %v49_v5  ;;  %v57_v10 = vstv %s78_s24 }
  0x19   :  { %v58_v11 = vmul.f32 %v57_v10, %v55_v7 }
  0x1a   :  { %v53_v12 = vadd.f32 %v52_v9, %v47_v8 }
  0x1c   :  { %v59_v14 = vadd.f32 %v58_v11, %v53_v12 }
  0x1e   :  { %v62_v15 = vadd.f32 %v61_v13, %v59_v14 }
  0x20   :  { %v79_v16 = vmul.f32 -1.442695, %v62_v15 }
  0x22   :  { %81 = vpow2.f32 %v79_v16 }
  0x2f   :  { %v82_v17 = vpop.eup %81 }
  0x30   :  { %v66_v18 = vadd.f32 1.0, %v82_v17 }
  0x32   :  { %83 = vrcp.f32 %v66_v18 }
  0x3f   :  { %v84_v19 = vpop.eup %83 }
  0x40   :  { %69 = vst [vmem:[%s141_s3] sm:$0x1] %v84_v19 }
  0x41   :  { %74 = vsyncpa [#allocation4], 1 }

</bundles_post_ra>
